<compile_context>
chip_gen: v5e
topology: v5e:2x2
jax: 0.10.0
libtpu: 0.0.40
codegen_flags: <defaults>
</compile_context>

<pallas_src>
import jax
import jax.numpy as jnp
from jax import lax
from jax.experimental import pallas as pl
from jax.experimental.pallas import tpu as pltpu


_LANE = 128
_SUBLANE = 8
_MAX_TILE_B = 128                       # 128-aligned tiles: matches v5e MXU, fine on v6e/v7x
_VMEM_LIMIT = 48 * 1024 * 1024          # explicit: above 16/32 MiB scoped defaults, below v7x 64 MiB
_EPS = 1e-8


def _round_up(n, m):
    return (n + m - 1) // m * m


def normalize_kernel(x_ref, y_ref, xn_ref, yn_ref):
    """Row-wise L2 normalization of a [tb, D] tile of x and y (rsqrt on the EUP)."""
    eps2 = jnp.float32(_EPS * _EPS)
    x = x_ref[...].astype(jnp.float32)
    y = y_ref[...].astype(jnp.float32)
    # 1 / max(||row||, eps) == rsqrt(max(sum(row^2), eps^2))
    xn_ref[...] = x * lax.rsqrt(jnp.maximum(jnp.sum(x * x, axis=-1, keepdims=True), eps2))
    yn_ref[...] = y * lax.rsqrt(jnp.maximum(jnp.sum(y * y, axis=-1, keepdims=True), eps2))


# Contract the last dims of both operands: A @ B^T without materializing a transpose.
_DOT_T = (((1,), (1,)), ((), ()))


def sim_mse_kernel(xi_ref, xj_ref, yi_ref, yj_ref, out_ref, acc_ref):
    """Accumulates sum((cos_sim_x[i,j] - cos_sim_y[i,j])^2) across the j grid axis."""
    j = pl.program_id(1)

    @pl.when(j == 0)
    def _():
        acc_ref[...] = jnp.zeros_like(acc_ref)

    sim_x = lax.dot_general(xi_ref[...], xj_ref[...], _DOT_T,
                            preferred_element_type=jnp.float32)
    sim_y = lax.dot_general(yi_ref[...], yj_ref[...], _DOT_T,
                            preferred_element_type=jnp.float32)
    diff = sim_x - sim_y
    acc_ref[...] += diff * diff          # elementwise (VPU) only in the inner loop

    @pl.when(j == pl.num_programs(1) - 1)
    def _():
        # Single cross-lane reduce per i; broadcast into a lane-dense output block.
        out_ref[...] = jnp.full(out_ref.shape, jnp.sum(acc_ref[...]), dtype=jnp.float32)


def enforcer_forward(x, y):
    """x, y: [B, D]  ->  scalar f32 = MSE(cos_sim_matrix(x), cos_sim_matrix(y))."""
    assert x.shape == y.shape and x.ndim == 2
    B, D = x.shape

    tb = min(_MAX_TILE_B, _round_up(B, _SUBLANE))
    B_pad = _round_up(B, tb)
    D_pad = _round_up(D, _LANE)
    grid_i = B_pad // tb

    # Zero-pad rows/cols: padded rows normalize to all-zero rows, which contribute
    # exactly 0 to both similarity matrices, hence 0 to the squared-diff sum.
    xp = jnp.zeros((B_pad, D_pad), jnp.float32).at[:B, :D].set(x.astype(jnp.float32))
    yp = jnp.zeros((B_pad, D_pad), jnp.float32).at[:B, :D].set(y.astype(jnp.float32))

    # --- pass 1: row normalization (each row normalized exactly once) ---
    row_spec = pl.BlockSpec((tb, D_pad), lambda r: (r, 0))
    xn, yn = pl.pallas_call(
        normalize_kernel,
        out_shape=(jax.ShapeDtypeStruct((B_pad, D_pad), jnp.float32),
                   jax.ShapeDtypeStruct((B_pad, D_pad), jnp.float32)),
        grid=(grid_i,),
        in_specs=[row_spec, row_spec],
        out_specs=(row_spec, row_spec),
        compiler_params=pltpu.CompilerParams(
            dimension_semantics=("parallel",),
            vmem_limit_bytes=_VMEM_LIMIT),
    )(xp, yp)

    # --- pass 2: tiled similarity-MSE accumulation (never forms the BxB matrices) ---
    i_spec = pl.BlockSpec((tb, D_pad), lambda i, j: (i, 0))
    j_spec = pl.BlockSpec((tb, D_pad), lambda i, j: (j, 0))
    partials = pl.pallas_call(
        sim_mse_kernel,
        out_shape=jax.ShapeDtypeStruct((grid_i, _SUBLANE, _LANE), jnp.float32),
        grid=(grid_i, grid_i),
        in_specs=[i_spec, j_spec, i_spec, j_spec],
        out_specs=pl.BlockSpec((1, _SUBLANE, _LANE), lambda i, j: (i, 0, 0)),
        scratch_shapes=[pltpu.VMEM((tb, tb), jnp.float32)],
        compiler_params=pltpu.CompilerParams(
            dimension_semantics=("parallel", "arbitrary"),
            vmem_limit_bytes=_VMEM_LIMIT),
    )(xn, xn, yn, yn)

    return jnp.sum(partials[:, 0, 0]) / jnp.float32(B * B)


def enforcer_reference(x, y):
    """Pure-JAX reference mirroring loss=MSE, similarity=cosine-sim matrix."""
    eps = 1e-8
    xn = x / jnp.maximum(jnp.linalg.norm(x, axis=-1, keepdims=True), eps)
    yn = y / jnp.maximum(jnp.linalg.norm(y, axis=-1, keepdims=True), eps)
    sx = xn @ xn.T
    sy = yn @ yn.T
    return jnp.mean((sx - sy) ** 2)


if __name__ == "__main__":
    key = jax.random.PRNGKey(0)
    kx, ky = jax.random.split(key)

    fwd = jax.jit(enforcer_forward)

    # Small shapes consistent with the module: batch of 8 embeddings, hidden=32.
    B, D = 8, 32
    x = jax.random.normal(kx, (B, D), dtype=jnp.float32)
    y = jax.random.normal(ky, (B, D), dtype=jnp.float32)
    loss = jax.block_until_ready(fwd(x, y))
    ref = jax.block_until_ready(enforcer_reference(x, y))
    assert jnp.allclose(loss, ref, rtol=1e-5, atol=1e-5), (loss, ref)

    # Exercise the tiled / padded path: grid 2x2, padded rows and lanes.
    x2 = jax.random.normal(kx, (192, 96), dtype=jnp.float32)
    y2 = jax.random.normal(ky, (192, 96), dtype=jnp.float32)
    loss2 = jax.block_until_ready(fwd(x2, y2))
    ref2 = jax.block_until_ready(enforcer_reference(x2, y2))
    assert jnp.allclose(loss2, ref2, rtol=1e-4, atol=1e-5), (loss2, ref2)

    print("KERNEL_OK")
</pallas_src>

<mosaic_0001>
module attributes {stable_mosaic.version = 11 : i64} {
  func.func @normalize_kernel(%arg0: i32, %arg1: memref<8x128xf32, #tpu.memory_space<vmem>>, %arg2: memref<8x128xf32, #tpu.memory_space<vmem>>, %arg3: memref<8x128xf32, #tpu.memory_space<vmem>>, %arg4: memref<8x128xf32, #tpu.memory_space<vmem>>) attributes {dimension_semantics = [#tpu.dimension_semantics<parallel>], iteration_bounds = array<i64: 1>, scalar_prefetch = 0 : i64, scratch_operands = 0 : i64, tpu.core_type = #tpu.core_type<tc>, window_params = [{transform_indices = @transform_0, window_bounds = array<i64: 8, 128>}, {transform_indices = @transform_1, window_bounds = array<i64: 8, 128>}, {transform_indices = @transform_2, window_bounds = array<i64: 8, 128>}, {transform_indices = @transform_3, window_bounds = array<i64: 8, 128>}]} {
    %c0 = arith.constant 0 : index
    %c0_0 = arith.constant 0 : index
    %0 = vector.load %arg1[%c0, %c0_0] : memref<8x128xf32, #tpu.memory_space<vmem>>, vector<8x128xf32>
    %c0_1 = arith.constant 0 : index
    %c0_2 = arith.constant 0 : index
    %1 = vector.load %arg2[%c0_1, %c0_2] : memref<8x128xf32, #tpu.memory_space<vmem>>, vector<8x128xf32>
    %2 = arith.mulf %0, %0 : vector<8x128xf32>
    %cst = arith.constant dense<0.000000e+00> : vector<8xf32>
    %3 = vector.multi_reduction <add>, %2, %cst [1] : vector<8x128xf32> to vector<8xf32>
    %4 = vector.shape_cast %3 : vector<8xf32> to vector<8x1xf32>
    %cst_3 = arith.constant 1.000000e-16 : f32
    %5 = vector.broadcast %cst_3 : f32 to vector<8x1xf32>
    %6 = arith.maximumf %4, %5 : vector<8x1xf32>
    %7 = math.rsqrt %6 : vector<8x1xf32>
    %8 = vector.broadcast %7 : vector<8x1xf32> to vector<8x128xf32>
    %9 = arith.mulf %0, %8 : vector<8x128xf32>
    %c0_4 = arith.constant 0 : index
    %c0_5 = arith.constant 0 : index
    %10 = vector.load %arg3[%c0_4, %c0_5] : memref<8x128xf32, #tpu.memory_space<vmem>>, vector<8x128xf32>
    tpu.vector_store %arg3[%c0_4, %c0_5], %9 {strides = array<i32>} : memref<8x128xf32, #tpu.memory_space<vmem>>, vector<8x128xf32>,
    %11 = arith.mulf %1, %1 : vector<8x128xf32>
    %cst_6 = arith.constant dense<0.000000e+00> : vector<8xf32>
    %12 = vector.multi_reduction <add>, %11, %cst_6 [1] : vector<8x128xf32> to vector<8xf32>
    %13 = vector.shape_cast %12 : vector<8xf32> to vector<8x1xf32>
    %cst_7 = arith.constant 1.000000e-16 : f32
    %14 = vector.broadcast %cst_7 : f32 to vector<8x1xf32>
    %15 = arith.maximumf %13, %14 : vector<8x1xf32>
    %16 = math.rsqrt %15 : vector<8x1xf32>
    %17 = vector.broadcast %16 : vector<8x1xf32> to vector<8x128xf32>
    %18 = arith.mulf %1, %17 : vector<8x128xf32>
    %c0_8 = arith.constant 0 : index
    %c0_9 = arith.constant 0 : index
    %19 = vector.load %arg4[%c0_8, %c0_9] : memref<8x128xf32, #tpu.memory_space<vmem>>, vector<8x128xf32>
    tpu.vector_store %arg4[%c0_8, %c0_9], %18 {strides = array<i32>} : memref<8x128xf32, #tpu.memory_space<vmem>>, vector<8x128xf32>,
    return
  }
  func.func @transform_0(%arg0: i32) -> (i32, i32) {
    %c0_i32 = arith.constant 0 : i32
    %c0_i32_0 = arith.constant 0 : i32
    return %arg0, %c0_i32 : i32, i32
  }
  func.func @transform_1(%arg0: i32) -> (i32, i32) {
    %c0_i32 = arith.constant 0 : i32
    %c0_i32_0 = arith.constant 0 : i32
    return %arg0, %c0_i32 : i32, i32
  }
  func.func @transform_2(%arg0: i32) -> (i32, i32) {
    %c0_i32 = arith.constant 0 : i32
    %c0_i32_0 = arith.constant 0 : i32
    return %arg0, %c0_i32 : i32, i32
  }
  func.func @transform_3(%arg0: i32) -> (i32, i32) {
    %c0_i32 = arith.constant 0 : i32
    %c0_i32_0 = arith.constant 0 : i32
    return %arg0, %c0_i32 : i32, i32
  }
}

module attributes {stable_mosaic.version = 11 : i64} {
  func.func @sim_mse_kernel(%arg0: i32, %arg1: i32, %arg2: memref<8x128xf32, #tpu.memory_space<vmem>>, %arg3: memref<8x128xf32, #tpu.memory_space<vmem>>, %arg4: memref<8x128xf32, #tpu.memory_space<vmem>>, %arg5: memref<8x128xf32, #tpu.memory_space<vmem>>, %arg6: memref<1x8x128xf32, #tpu.memory_space<vmem>>, %arg7: memref<8x8xf32, #tpu.memory_space<vmem>>) attributes {dimension_semantics = [#tpu.dimension_semantics<parallel>, #tpu.dimension_semantics<arbitrary>], iteration_bounds = array<i64: 1, 1>, scalar_prefetch = 0 : i64, scratch_operands = 1 : i64, tpu.core_type = #tpu.core_type<tc>, window_params = [{transform_indices = @transform_0, window_bounds = array<i64: 8, 128>}, {transform_indices = @transform_1, window_bounds = array<i64: 8, 128>}, {transform_indices = @transform_2, window_bounds = array<i64: 8, 128>}, {transform_indices = @transform_3, window_bounds = array<i64: 8, 128>}, {transform_indices = @transform_4, window_bounds = array<i64: 1, 8, 128>}]} {
    %c0_i32 = arith.constant 0 : i32
    %0 = arith.cmpi eq, %arg1, %c0_i32 : i32
    %1 = arith.extui %0 : i1 to i32
    %c0_i32_0 = arith.constant 0 : i32
    %2 = arith.cmpi ne, %1, %c0_i32_0 : i32
    scf.if %2 {
      %cst_15 = arith.constant 0.000000e+00 : f32
      %17 = vector.broadcast %cst_15 : f32 to vector<8x8xf32>
      %c0_16 = arith.constant 0 : index
      %c0_17 = arith.constant 0 : index
      %18 = vector.load %arg7[%c0_16, %c0_17] : memref<8x8xf32, #tpu.memory_space<vmem>>, vector<8x8xf32>
      tpu.vector_store %arg7[%c0_16, %c0_17], %17 {strides = array<i32>} : memref<8x8xf32, #tpu.memory_space<vmem>>, vector<8x8xf32>,
    } else {
    }
    %c0 = arith.constant 0 : index
    %c0_1 = arith.constant 0 : index
    %3 = vector.load %arg2[%c0, %c0_1] : memref<8x128xf32, #tpu.memory_space<vmem>>, vector<8x128xf32>
    %c0_2 = arith.constant 0 : index
    %c0_3 = arith.constant 0 : index
    %4 = vector.load %arg3[%c0_2, %c0_3] : memref<8x128xf32, #tpu.memory_space<vmem>>, vector<8x128xf32>
    %cst = arith.constant dense<0.000000e+00> : vector<8x8xf32>
    %5 = tpu.matmul %3, %4, %cst {dimension_numbers = #tpu.dot_dimension_numbers<[1], [1], [0], [0], [0, 0, 1, 0], [], []>} : vector<8x128xf32>, vector<8x128xf32>, vector<8x8xf32> -> vector<8x8xf32>
    %c0_4 = arith.constant 0 : index
    %c0_5 = arith.constant 0 : index
    %6 = vector.load %arg4[%c0_4, %c0_5] : memref<8x128xf32, #tpu.memory_space<vmem>>, vector<8x128xf32>
    %c0_6 = arith.constant 0 : index
    %c0_7 = arith.constant 0 : index
    %7 = vector.load %arg5[%c0_6, %c0_7] : memref<8x128xf32, #tpu.memory_space<vmem>>, vector<8x128xf32>
    %cst_8 = arith.constant dense<0.000000e+00> : vector<8x8xf32>
    %8 = tpu.matmul %6, %7, %cst_8 {dimension_numbers = #tpu.dot_dimension_numbers<[1], [1], [0], [0], [0, 0, 1, 0], [], []>} : vector<8x128xf32>, vector<8x128xf32>, vector<8x8xf32> -> vector<8x8xf32>
    %9 = arith.subf %5, %8 : vector<8x8xf32>
    %c0_9 = arith.constant 0 : index
    %c0_10 = arith.constant 0 : index
    %10 = vector.load %arg7[%c0_9, %c0_10] : memref<8x8xf32, #tpu.memory_space<vmem>>, vector<8x8xf32>
    %11 = arith.mulf %9, %9 : vector<8x8xf32>
    %12 = arith.addf %10, %11 : vector<8x8xf32>
    %c0_11 = arith.constant 0 : index
    %c0_12 = arith.constant 0 : index
    %13 = vector.load %arg7[%c0_11, %c0_12] : memref<8x8xf32, #tpu.memory_space<vmem>>, vector<8x8xf32>
    tpu.vector_store %arg7[%c0_11, %c0_12], %12 {strides = array<i32>} : memref<8x8xf32, #tpu.memory_space<vmem>>, vector<8x8xf32>,
    %c0_i32_13 = arith.constant 0 : i32
    %14 = arith.cmpi eq, %arg1, %c0_i32_13 : i32
    %15 = arith.extui %14 : i1 to i32
    %c0_i32_14 = arith.constant 0 : i32
    %16 = arith.cmpi ne, %15, %c0_i32_14 : i32
    scf.if %16 {
      %c0_15 = arith.constant 0 : index
      %c0_16 = arith.constant 0 : index
      %17 = vector.load %arg7[%c0_15, %c0_16] : memref<8x8xf32, #tpu.memory_space<vmem>>, vector<8x8xf32>
      %18 = vector.shape_cast %17 : vector<8x8xf32> to vector<1x8x8xf32>
      %cst_17 = arith.constant dense<0.000000e+00> : vector<1xf32>
      %19 = vector.multi_reduction <add>, %18, %cst_17 [1, 2] : vector<1x8x8xf32> to vector<1xf32>
      %20 = vector.shape_cast %19 : vector<1xf32> to vector<1x1x1xf32>
      %21 = vector.extract %20[0, 0, 0] : f32 from vector<1x1x1xf32>
      %22 = vector.broadcast %21 : f32 to vector<1x8x128xf32>
      %c0_18 = arith.constant 0 : index
      %c0_19 = arith.constant 0 : index
      %c0_20 = arith.constant 0 : index
      %23 = vector.load %arg6[%c0_18, %c0_19, %c0_20] : memref<1x8x128xf32, #tpu.memory_space<vmem>>, vector<1x8x128xf32>
      tpu.vector_store %arg6[%c0_18, %c0_19, %c0_20], %22 {strides = array<i32>} : memref<1x8x128xf32, #tpu.memory_space<vmem>>, vector<1x8x128xf32>,
    } else {
    }
    return
  }
  func.func @transform_0(%arg0: i32, %arg1: i32) -> (i32, i32) {
    %c0_i32 = arith.constant 0 : i32
    %c0_i32_0 = arith.constant 0 : i32
    return %arg0, %c0_i32 : i32, i32
  }
  func.func @transform_1(%arg0: i32, %arg1: i32) -> (i32, i32) {
    %c0_i32 = arith.constant 0 : i32
    %c0_i32_0 = arith.constant 0 : i32
    return %arg1, %c0_i32 : i32, i32
  }
  func.func @transform_2(%arg0: i32, %arg1: i32) -> (i32, i32) {
    %c0_i32 = arith.constant 0 : i32
    %c0_i32_0 = arith.constant 0 : i32
    return %arg0, %c0_i32 : i32, i32
  }
  func.func @transform_3(%arg0: i32, %arg1: i32) -> (i32, i32) {
    %c0_i32 = arith.constant 0 : i32
    %c0_i32_0 = arith.constant 0 : i32
    return %arg1, %c0_i32 : i32, i32
  }
  func.func @transform_4(%arg0: i32, %arg1: i32) -> (i32, i32, i32) {
    %c0_i32 = arith.constant 0 : i32
    %c0_i32_0 = arith.constant 0 : i32
    %c0_i32_1 = arith.constant 0 : i32
    return %arg0, %c0_i32, %c0_i32_0 : i32, i32, i32
  }
}

</mosaic_0001>

<bundles_post_ra>
// kernel: enforcer_forward.2
= control target key start
LH: loop header
LB: loop body
LE: loop exit
PB: predicated region body
PF: predicated region fallthrough
CT: control target
= control target key end

     0   :  { %s91_s0 = inlined_call_operand.vmem [shape: f32[8,128], index: 0, kind: input, shape index: {}]   ;;  %s92_s1 = inlined_call_operand.vmem [shape: f32[8,128], index: 1, kind: input, shape index: {}]   ;;  %s93_s2 = inlined_call_operand.vmem [shape: f32[8,128], index: 2, kind: output, shape index: {0}]   ;;  %s94_s3 = inlined_call_operand.vmem [shape: f32[8,128], index: 3, kind: output, shape index: {1}]  }
   0x1   :  { %v13_v0 = vld [vmem:[%s91_s0] sm:$0xff] }
   0x2   :  { %v15_v1 = vmul.f32 %v13_v0, %v13_v0  ;;  %v14_v2 = vld [vmem:[%s92_s1] sm:$0xff] }
   0x3   :  { %v31_v3 = vmul.f32 %v14_v2, %v14_v2 }
   0x4   :  { %16 = vadd.xlane.f32.xlu0 %v15_v1 }
   0xc   :  { %32 = vadd.xlane.f32.xlu0 %v31_v3 }
  0x77   :  { %v17_v4 = vpop.xlane.xlu0 %16 }
  0x78   :  { %v18_v5 = vmax.f32 %v17_v4, 1e-16 }
  0x7a   :  { %55 = vrsqrt.f32 %v18_v5  ;;  %vm25_vm1 = vweird.f32 %v18_v5 }
  0x7f   :  { %v33_v6 = vpop.xlane.xlu0 %32 }
  0x80   :  { %v56_v7 = vpop.eup %55  ;;  %v34_v8 = vmax.f32 %v33_v6, 1e-16 }
  0x81   :  { %v20_v9 = vmul.f32 %v56_v7, %v18_v5  ;;  %vm26_vm0 = vweird.f32 %v56_v7 }
  0x82   :  { %57 = vrsqrt.f32 %v34_v8  ;;  %vm27_vm2 = vmor %vm25_vm1, %vm26_vm0  ;;  %vm41_vm4 = vweird.f32 %v34_v8 }
  0x83   :  { %v21_v10 = vmul.f32 %v56_v7, %v20_v9 }
  0x85   :  { %v22_v11 = vmul.f32 0.5, %v21_v10 }
  0x87   :  { %v23_v12 = vsub.f32 1.5, %v22_v11 }
  0x88   :  { %v58_v13 = vpop.eup %57 }
  0x89   :  { %v24_v14 = vmul.f32 %v56_v7, %v23_v12  ;;  %v36_v15 = vmul.f32 %v58_v13, %v34_v8  ;;  %vm42_vm3 = vweird.f32 %v58_v13 }
  0x8a   :  { %vm43_vm5 = vmor %vm41_vm4, %vm42_vm3 }
  0x8b   :  { %v28_v16 = vsel %vm27_vm2, %v56_v7, %v24_v14  ;;  %v37_v17 = vmul.f32 %v58_v13, %v36_v15 }
  0x8c   :  { %v29_v18 = vmul.f32 %v28_v16, %v13_v0 }
  0x8d   :  { %v38_v19 = vmul.f32 0.5, %v37_v17 }
  0x8e   :  { %30 = vst [vmem:[%s93_s2] sm:$0xff] %v29_v18 }
  0x8f   :  { %v39_v20 = vsub.f32 1.5, %v38_v19 }
  0x91   :  { %v40_v21 = vmul.f32 %v58_v13, %v39_v20 }
  0x93   :  { %v44_v22 = vsel %vm43_vm5, %v58_v13, %v40_v21 }
  0x94   :  { %v45_v23 = vmul.f32 %v44_v22, %v14_v2 }
  0x96   :  { %46 = vst [vmem:[%s94_s3] sm:$0xff] %v45_v23 }

// kernel: enforcer_forward.3
= control target key start
LH: loop header
LB: loop body
LE: loop exit
PB: predicated region body
PF: predicated region fallthrough
CT: control target
= control target key end

     0   :  { %vm21_vm0 = vcmask 64512   ;;  %v96_v4 = vmov 0.0   ;;  %s137_s1 = inlined_call_operand.vmem [shape: f32[8,128], index: 1, kind: input, shape index: {}, may-alias: {0,1}]   ;;  %s138_s3 = inlined_call_operand.vmem [shape: f32[8,128], index: 3, kind: input, shape index: {}, may-alias: {2,3}]   ;;  %s139_s0 = inlined_call_operand.vmem [shape: f32[8,128], index: 0, kind: input, shape index: {}, may-alias: {0,1}]   ;;  %s140_s2 = inlined_call_operand.vmem [shape: f32[8,128], index: 2, kind: input, shape index: {}, may-alias: {2,3}]   ;;  %s141_s4 = inlined_call_operand.vmem [shape: f32[1,8,128], index: 4, kind: output, shape index: {}]  }
   0x1   :  { %v24_v0 = vld [vmem:[%s137_s1] sm:$0xff]  ;;  %22 = vst.msk [vmem:[#allocation2] sm:$0xff] %vm21_vm0, %v96_v4 }
   0x2   :  { %v46_v1 = vld [vmem:[%s138_s3] sm:$0xff]  ;;  %40 = vmatpush.xpose.msra.mxu0 %v24_v0 }
   0x3   :  { %62 = vmatpush.xpose.msra.mxu1 %v46_v1  ;;  %v23_v2 = vld [vmem:[%s139_s0] sm:$0xff] }
   0x4   :  { %v45_v3 = vld [vmem:[%s140_s2] sm:$0xff] }
   0x5   :  { %41 = vmatmul.f32.vlgmr.msra.gmra.mxu0 %v23_v2 }
   0x6   :  { %63 = vmatmul.f32.vlgmr.msra.gmra.mxu1 %v45_v3 }
   0x8   :  { %v68_v8 = vld [vmem:[#allocation2] sm:$0xff] }
  0x82   :  { %v42_v5 = vpop.f32.mrf.mxu0 }
  0x83   :  { %v64_v6 = vpop.f32.mrf.mxu1 }
  0x84   :  { %v67_v7 = vsub.f32 %v42_v5, %v64_v6 }
  0x86   :  { %v69_v9 = vmul.f32 %v67_v7, %v67_v7 }
  0x88   :  { %v70_v10 = vadd.f32 %v69_v9, %v68_v8 }
  0x8a   :  { %72 = vst.msk [vmem:[#allocation2] sm:$0xff] %vm21_vm0, %v70_v10 }
  0x91   :  { %v76_v11 = vld [vmem:[#allocation2] sm:$0xff] }
  0x92   :  { %v77_v12 = vsel %vm21_vm0, %v76_v11, 0.0 }
  0x93   :  { %78 = vadd.xlane.f32.xlu0 %v77_v12 }
 0x106   :  { %v79_v13 = vpop.xlane.xlu0 %78 }
 0x107   :  { %v80_v14 = vrot.slane %v79_v13, 4 }
 0x109   :  { %v81_v15 = vadd.f32 %v80_v14, %v79_v13 }
 0x10b   :  { %v82_v16 = vrot.slane %v81_v15, 2 }
 0x10d   :  { %v83_v17 = vadd.f32 %v82_v16, %v81_v15 }
 0x10f   :  { %v84_v18 = vrot.slane %v83_v17, 1 }
 0x111   :  { %v85_v19 = vadd.f32 %v84_v18, %v83_v17 }
 0x113   :  { %93 = vpush %v85_v19 }
 0x144   :  { %s94_s0 = spop %93 }
 0x145   :  { %v87_v20 = vstv %s94_s0 }
 0x146   :  { %88 = vst [vmem:[%s141_s4] sm:$0xff] %v87_v20 }

</bundles_post_ra>
